<compile_context>
chip_gen: v5e
topology: v5e:2x2
jax: 0.10.0
libtpu: 0.0.40
codegen_flags: <defaults>
</compile_context>

<pallas_src>
import jax
import jax.numpy as jnp
from jax.experimental import pallas as pl
from jax.experimental.pallas import tpu as pltpu

_LANE = 128
_TARGET_TILE_BYTES = 1 << 20  # ~1 MiB payload per tile (mem-bound sweet spot)


def _dropconnect_kernel(scale_ref, x_ref, o_ref):
    # scale_ref: SMEM float32[B] (scalar-prefetch); 0.0 = drop sample,
    #            1/keep_prob = keep sample.
    # x_ref / o_ref: VMEM (1, TILE_R, LW) tiles of the flattened sample.
    b = pl.program_id(0)
    o_ref[...] = x_ref[...] * scale_ref[b].astype(x_ref.dtype)


def _choose_tiling(n_features, itemsize):
    """Pick (lw, rows, tile_r) for viewing one sample of `n_features` elements
    as a (rows, lw) slab tiled as (tile_r, lw) blocks."""
    n128 = pl.cdiv(n_features, _LANE) * _LANE

    # Sublane-packing multiple for this dtype: 8 (f32), 16 (bf16), 32 (i8/fp8).
    sub = max(8, 32 // itemsize)

    # Lane-width candidates: multiples of 128 dividing the lane-padded feature
    # count exactly -> every block is lane-dense and unmasked.
    cands = [c for c in (1024, 512, 256, 128) if n128 % c == 0]
    # Prefer the widest lane dim whose resulting row count still fills whole
    # sublane groups (rows % sub == 0), so vregs are fully packed even for
    # small feature maps; otherwise fall back to the narrowest (=> most rows
    # => best sublane utilisation attainable).
    lw = None
    for c in cands:
        if (n128 // c) % sub == 0:
            lw = c
            break
    if lw is None:
        lw = cands[-1]  # 128 always divides n128
    rows = n128 // lw

    # Row tile: ~1 MiB of payload, a multiple of `sub`, ideally dividing
    # `rows` so every block is full (no masked boundary stores).
    max_tile_r = max(sub, (_TARGET_TILE_BYTES // (lw * itemsize)) // sub * sub)
    if rows <= max_tile_r:
        tile_r = rows  # block dim == full array dim -> always legal
    else:
        tile_r = max_tile_r  # fallback: one partial (masked) boundary block
        for cand in range(max_tile_r, sub - 1, -sub):
            if rows % cand == 0:
                tile_r = cand
                break
    return lw, rows, tile_r


def drop_connect_2d(x, key, p=0.2, training=True):
    """JAX/Pallas equivalent of hyperion DropConnect2d.forward.

    Args:
      x: (B, C, H, W) array.
      key: jax PRNG key (replaces torch's global RNG state).
      p: probability of dropping the whole feature map of a sample.
      training: if False, identity (matches nn.Module eval mode).

    Returns:
      (B, C, H, W) array, same dtype as x.
    """
    if not training:
        return x

    B = x.shape[0]
    N = 1
    for d in x.shape[1:]:
        N *= int(d)
    keep_prob = 1.0 - p

    # Glue (matches torch: binary = floor(rand(B,1,1,1) + keep_prob)), folded
    # together with the 1/keep_prob normalization into one per-sample scale.
    rand = jax.random.uniform(key, (B,), dtype=jnp.float32) + keep_prob
    scale = jnp.floor(rand) * jnp.float32(1.0 / keep_prob)  # 0 or 1/keep_prob

    itemsize = jnp.dtype(x.dtype).itemsize
    lw, rows, tile_r = _choose_tiling(N, itemsize)
    n_pad = rows * lw

    x2 = x.reshape(B, N)
    if n_pad != N:
        # Rare path (feature count not a multiple of 128): lane-pad so kernel
        # stores stay full-width and unmasked.
        x2 = jnp.pad(x2, ((0, 0), (0, n_pad - N)))
    x3 = x2.reshape(B, rows, lw)

    grid = (B, pl.cdiv(rows, tile_r))

    out3 = pl.pallas_call(
        _dropconnect_kernel,
        out_shape=jax.ShapeDtypeStruct((B, rows, lw), x.dtype),
        grid_spec=pltpu.PrefetchScalarGridSpec(
            num_scalar_prefetch=1,
            grid=grid,
            in_specs=[pl.BlockSpec((1, tile_r, lw), lambda b, r, scale: (b, r, 0))],
            out_specs=pl.BlockSpec((1, tile_r, lw), lambda b, r, scale: (b, r, 0)),
        ),
        compiler_params=pltpu.CompilerParams(
            dimension_semantics=("parallel", "parallel"),
            # Tiles are <= ~1 MiB, so in+out double-buffering needs only a few
            # MiB; 32 MiB keeps headroom and is safe on v5e/v6e/v7x.
            vmem_limit_bytes=32 * 1024 * 1024,
        ),
        cost_estimate=pl.CostEstimate(
            flops=B * n_pad,
            transcendentals=0,
            bytes_accessed=2 * B * n_pad * itemsize,
        ),
    )(scale, x3)

    out2 = out3.reshape(B, n_pad)
    if n_pad != N:
        out2 = out2[:, :N]
    return out2.reshape(x.shape)


if __name__ == "__main__":
    key = jax.random.PRNGKey(0)
    k_x, k_drop = jax.random.split(key)

    B, C, H, W = 2, 4, 16, 16
    x = jax.random.normal(k_x, (B, C, H, W), dtype=jnp.float32)

    p = 0.2
    out = drop_connect_2d(x, k_drop, p=p, training=True)
    out = jax.block_until_ready(out)

    # Pure-JAX reference (same RNG stream as the wrapper).
    keep_prob = 1.0 - p
    rand = jax.random.uniform(k_drop, (B,), dtype=jnp.float32) + keep_prob
    binary = jnp.floor(rand).reshape(B, 1, 1, 1)
    ref = x / keep_prob * binary

    assert out.shape == (B, C, H, W)
    assert out.dtype == x.dtype
    assert jnp.allclose(out, ref, atol=1e-6, rtol=1e-6), "mismatch vs reference"

    # Eval mode is identity.
    out_eval = drop_connect_2d(x, k_drop, p=p, training=False)
    assert jnp.array_equal(out_eval, x)

    print("KERNEL_OK")
</pallas_src>

<mosaic_0001>
module attributes {stable_mosaic.version = 11 : i64} {
  func.func @_dropconnect_kernel(%arg0: i32, %arg1: i32, %arg2: memref<2xf32, #tpu.memory_space<smem>>, %arg3: memref<1x8x128xf32, #tpu.memory_space<vmem>>, %arg4: memref<1x8x128xf32, #tpu.memory_space<vmem>>) attributes {dimension_semantics = [#tpu.dimension_semantics<parallel>, #tpu.dimension_semantics<parallel>], iteration_bounds = array<i64: 2, 1>, scalar_prefetch = 1 : i64, scratch_operands = 0 : i64, tpu.core_type = #tpu.core_type<tc>, window_params = [{transform_indices = @transform_0, window_bounds = array<i64: 1, 8, 128>}, {transform_indices = @transform_1, window_bounds = array<i64: 1, 8, 128>}]} {
    %c0 = arith.constant 0 : index
    %c0_0 = arith.constant 0 : index
    %c0_1 = arith.constant 0 : index
    %0 = vector.load %arg3[%c0, %c0_0, %c0_1] : memref<1x8x128xf32, #tpu.memory_space<vmem>>, vector<1x8x128xf32>
    %1 = arith.index_cast %arg0 : i32 to index
    %2 = memref.load %arg2[%1] : memref<2xf32, #tpu.memory_space<smem>>
    %3 = vector.broadcast %2 : f32 to vector<1x8x128xf32>
    %4 = arith.mulf %0, %3 : vector<1x8x128xf32>
    %c0_2 = arith.constant 0 : index
    %c0_3 = arith.constant 0 : index
    %c0_4 = arith.constant 0 : index
    %5 = vector.load %arg4[%c0_2, %c0_3, %c0_4] : memref<1x8x128xf32, #tpu.memory_space<vmem>>, vector<1x8x128xf32>
    tpu.vector_store %arg4[%c0_2, %c0_3, %c0_4], %4 {strides = array<i32>} : memref<1x8x128xf32, #tpu.memory_space<vmem>>, vector<1x8x128xf32>,
    return
  }
  func.func @transform_0(%arg0: i32, %arg1: i32, %arg2: memref<2xf32, #tpu.memory_space<smem>>) -> (i32, i32, i32) {
    %c0_i32 = arith.constant 0 : i32
    %c0_i32_0 = arith.constant 0 : i32
    return %arg0, %arg1, %c0_i32 : i32, i32, i32
  }
  func.func @transform_1(%arg0: i32, %arg1: i32, %arg2: memref<2xf32, #tpu.memory_space<smem>>) -> (i32, i32, i32) {
    %c0_i32 = arith.constant 0 : i32
    %c0_i32_0 = arith.constant 0 : i32
    return %arg0, %arg1, %c0_i32 : i32, i32, i32
  }
}

</mosaic_0001>

<bundles_post_ra>
// kernel: tpu_custom_call.1
= control target key start
LH: loop header
LB: loop body
LE: loop exit
PB: predicated region body
PF: predicated region fallthrough
CT: control target
= control target key end

     0   :  { %s466_s12 = smov [#allocation3]   ;;  %s606_s0 = inlined_call_operand.hbm [shape: f32[2], index: 0, kind: input, shape index: {}]   ;;  %s607_s1 = inlined_call_operand.hbm [shape: f32[2,8,128], index: 1, kind: input, shape index: {}]   ;;  %s608_s2 = inlined_call_operand.hbm [shape: f32[2,8,128], index: 2, kind: output, shape index: {}]  }
   0x1   :  { %s8_s11 = sshll.u32 %s606_s0, 4  ;;  %s9_s11 = int_to_ptr.hbm [resolvable:$true] %s8_s11 }
   0x2   :  { %11 = dma.hbm_to_smem %s9_s11, 16, %s466_s12, [#allocation2] }
   0x3   :  { %432 = dma.done.wait [#allocation2], 16 }
   0x4   :  { %433 = vsyncadd [#allocation2], 4294967280 }
   0x5   :  { %14 = sfence }
   0x6   :  { %15 = vsyncpa [#allocation5], 0 }
   0x7   :  { %17 = vsyncpa [#allocation5 + $0x1], 0 }
   0x8   :  { %18 = vsyncpa [#allocation6], 0 }
   0x9   :  { %20 = vsyncpa [#allocation6 + $0x1], 0  ;;  %s485_s13 = smov 0   ;;  %s487_s14 = smov 0  }
   0xa   :  { %s489_s15 = smov 0   ;;  %s491_s16 = smov 0  }
   0xb   :  { %s493_s17 = smov 0   ;;  %s495_s0 = smov 0  }
   0xc LB: > { %s262_s18 = sadd.s32 4294967295, %s464_s0   ;;  %s263_s19 = sadd.s32 4294967294, %s464_s0   ;;  %s464_s0 = sphi %s495_s0, %s26_s0   ;;  %s460_s17 = sphi %s493_s17, %s617_s17   ;;  %s456_s16 = sphi %s491_s16, %s616_s16   ;;  %s452_s15 = sphi %s489_s15, %s615_s15   ;;  %s448_s14 = sphi %s487_s14, %s614_s14   ;;  %s444_s13 = sphi %s485_s13, %s613_s13  }
   0xd   : > { %s38_s20 = sadd.s32 1, %s460_s17  ;;  %s47_s21 = sadd.s32 1, %s452_s15 }
   0xe   : > { %p40_p0 = scmp.ge.s32.totalorder %s38_s20, 2  ;;  %p54_p1 = scmp.ne.s32.totalorder %s452_s15, %s448_s14 }
   0xf   : > { %p55_p2 = scmp.eq.s32.totalorder %s464_s0, 0  ;;  %p60_p3 = scmp.ne.s32.totalorder %s448_s14, %s444_s13 }
  0x10   : > { %s619_s20 = smov (%p40_p0, %s38_s20), 0  ;;  %p61_p5 = scmp.eq.s32.totalorder %s262_s18, 0 }
  0x11   : > { %p526_p4 = por %p55_p2, %p54_p1  ;;  %s42_s23 = ssub.s32 %s460_s17, %s619_s20 }
  0x12   : > { %p86_p6 = scmp.eq.s32.totalorder %s262_s18, 1  ;;  %p45_p7 = scmp.eq.s32.totalorder %s42_s23, 0 }
  0x13   : > { %p532_p8 = por %p61_p5, %p60_p3  ;;  %p92_p10 = scmp.eq.s32.totalorder %s263_s19, 1 }
  0x14   : > { %p536_p9 = por %p86_p6, %p54_p1  ;;  %p265_p12 = scmp.ge.s32.totalorder %s464_s0, 2 }
  0x15   : > { %s541_s26 = scalar_select %p45_p7, %s452_s15, %s47_s21  }
  0x16   : > { %p543_p11 = por %p92_p10, %p60_p3  ;;  %p287_p13 = scmp.lt.s32.totalorder %s464_s0, 2 }
  0x17   : > { %s112_s28 = sand.u32 1, %s452_s15   ;;  %s267_s30 = sshll.u32 %s460_s17, 3 }
  0x18   : > { %s266_s29 = sshll.u32 %s112_s28, 3  ;;  %s121_s5 = scalar_lea.hbm %s607_s1, %s267_s30 }
  0x19   : > { %s116_s6 = scalar_lea.vmem [#allocation4], %s266_s29  ;;  %s123_s8 = sshll.u32 %s121_s5, 4  ;;  %s124_s8 = int_to_ptr.hbm [resolvable:$true] %s123_s8 }
  0x1a   : > { %s125_s7 = sshll.u32 %s116_s6, 4  ;;  %p280_p0 = pnand %p287_p13, %p526_p4  ;;  %s126_s7 = int_to_ptr.vmem [resolvable:$true] %s125_s7 }
  0x1b   : > { %p268_p1 = scmp.ge.s32.totalorder %s464_s0, 1  ;;  %p130_p2 = scmp.lt.s32.totalorder %s464_s0, 3 }
  0x1c   : > { %s113_s9 = scalar_lea.sflag [#allocation5], %s112_s28 }
  0x1d   : > { %282 = dma.hbm_to_vmem [thread:$0]  (!%p280_p0), %s124_s8, 128, %s126_s7, %s113_s9  }
  0x1e   : > { %p131_p3 = pnand %p268_p1, %p130_p2 }
  0x1f   : > { %s559_s10 = sand.u32 (!%p131_p3), 1, %s448_s14  }
  0x20   : > { %134 = sbr.rel (%p131_p3) target bundleno = 53 (0x35), region = 24  ;;  %s269_s11 = sshll.u32 (!%p131_p3), %s559_s10, 3 }
  0x21   : > { %s137_s12 = scalar_lea.sflag (!%p131_p3), [#allocation5], %s559_s10  ;;  %s140_s18 = scalar_lea.vmem (!%p131_p3), [#allocation4], %s269_s11 }
  0x25   : > { %435 = dma.done.wait (%p532_p8), %s137_s12, 128  }
  0x26   : > { %437 = vsyncadd (%p532_p8), %s137_s12, 4294967168  ;;  %s161_s19 = sld [smem:[#allocation3 + %s456_s16]]  ;;  %s272_s21 = sshll.u32 %s456_s16, 3  ;;  %v160_v0 = vld [vmem:[%s140_s18] sm:$0xff] }
  0x27   : > { %s177_s28 = scalar_lea.hbm %s608_s2, %s272_s21  ;;  %s159_s29 = scalar_lea.vmem [#allocation7], %s269_s11 }
  0x28   : > { %s179_s30 = sshll.u32 %s159_s29, 4  ;;  %s181_s3 = sshll.u32 %s177_s28, 4  ;;  %s180_s30 = int_to_ptr.vmem [resolvable:$true] %s179_s30  ;;  %s182_s3 = int_to_ptr.hbm [resolvable:$true] %s181_s3 }
  0x29   : > { %s166_s24 = scalar_lea.sflag [#allocation6], %s559_s10  ;;  %s394_s4 = sshra.s32 %s182_s3, 4  ;;  %s395_s4 = int_to_ptr.hbm [resolvable:$true] %s394_s4 }
  0x2a   : > { %s396_s5 = scalar_lea.hbm %s395_s4, 8  ;;  %s400_s7 = scalar_lea.hbm %s608_s2, 16 }
  0x2b   : > { %p397_p4 = scmp.ne.s32.totalorder %s395_s4, %s396_s5  ;;  %p401_p7 = scmp.lt.s32.totalorder %s395_s4, %s608_s2 }
  0x2c   : > { %v162_v1 = vstv %s161_s19  ;;  %p402_p8 = scmp.lt.s32.totalorder %s400_s7, %s396_s5 }
  0x2d   : > { %v163_v2 = vmul.f32 %v162_v1, %v160_v0  ;;  %p398_p5 = pnand %p397_p4, %p536_p9 }
  0x2e   : > { %p403_p10 = por %p402_p8, %p401_p7 }
  0x2f   : > { %164 = vst [vmem:[%s159_s29] sm:$0xff] %v163_v2  ;;  %p399_p6 = pneg %p398_p5 }
  0x31   : > { %p404_p13 = pnand %p403_p10, %p399_p6 }
  0x33   : > { %407 = shalt.err (!%p404_p13)
}
  0x34   : > { %277 = dma.vmem_to_hbm [thread:$0]  (%p536_p9), %s180_s30, 128, %s182_s3, %s166_s24  }
  0x35 PF: > { %s193_s10 = sand.u32 1, %s444_s13   ;;  %p284_p0 = pnand %p265_p12, %p543_p11 }
  0x36   : > { %s194_s11 = scalar_lea.sflag [#allocation6], %s193_s10 }
  0x37   : > { %p285_p1 = pneg %p284_p0 }
  0x39   : > { %439 = dma.done.wait (%p285_p1), %s194_s11, 128  }
  0x3a   : > { %441 = vsyncadd (%p285_p1), %s194_s11, 4294967168  ;;  %s26_s0 = sadd.s32 1, %s464_s0   ;;  %s613_s13 = smov %s448_s14 }
  0x3b   : > { %p23_p2 = scmp.ge.s32.totalorder %s26_s0, 4   ;;  %s614_s14 = smov %s452_s15 }
  0x3c   : > { %s615_s15 = smov %s541_s26  ;;  %s616_s16 = smov %s460_s17 }
  0x3d   : > { %s617_s17 = smov %s619_s20  ;;  %25 = sbr.rel (!%p23_p2) target bundleno = 12 (0xc), region = 69 }
  0x42   :  { %200 = vsyncpa [#allocation5], 1 }
  0x43   :  { %202 = vsyncpa [#allocation5 + $0x1], 1 }
  0x44   :  { %203 = vsyncpa [#allocation6], 1 }
  0x45   :  { %205 = vsyncpa [#allocation6 + $0x1], 1 }

</bundles_post_ra>
